<compile_context>
chip_gen: v6e
topology: v6e:2x2x1
jax: 0.10.0
libtpu: 0.0.40
codegen_flags: <defaults>
</compile_context>

<pallas_src>
import jax
import jax.numpy as jnp
from jax.experimental import pallas as pl
from jax.experimental.pallas import tpu as pltpu


def _round_up(x, m):
    return ((x + m - 1) // m) * m


def _device_kind():
    try:
        return jax.devices()[0].device_kind.lower()
    except Exception:
        return ""


def _lane_multiple():
    # v6e/v7x MXU is 256-wide; v5e is 128-wide.
    kind = _device_kind()
    return 256 if ("v6" in kind or "v7" in kind) else 128


def _vmem_cap_bytes():
    try:
        phys = int(pltpu.get_tpu_info().vmem_capacity_bytes)
    except Exception:
        phys = (64 << 20) if "v7" in _device_kind() else (128 << 20)
    # Leave headroom for compiler-internal scratch: ~52 MiB on v7x, ~105 MiB on v5e/v6e.
    return int(phys * 0.82)


def residual_block_kernel(x_ref, w1_ref, t1_ref, w2_ref, t2_ref, o_ref):
    x = x_ref[...]                                                  # (tn, Dp) bf16

    # Linear 1 + folded BatchNorm1d: h = x @ (W1^T * s1) + t1', then ReLU.
    h = jnp.dot(x, w1_ref[...], preferred_element_type=jnp.float32)  # MXU, f32 acc
    h = jnp.maximum(h + t1_ref[...], 0.0)

    # Dropout: identity in eval mode.

    # Linear 2 + folded BatchNorm1d.
    h = jnp.dot(h.astype(jnp.bfloat16), w2_ref[...],
                preferred_element_type=jnp.float32)
    h = h + t2_ref[...]

    # Residual add (f32) + output ReLU; store bf16.
    o_ref[...] = jnp.maximum(h + x.astype(jnp.float32), 0.0).astype(o_ref.dtype)


def _build_call(block_n, Dp, Np, vmem_limit, cost, single_buffer_weights):
    row_spec = pl.BlockSpec((block_n, Dp), lambda i: (i, 0))
    if single_buffer_weights:
        # Constant index_map -> resident in VMEM; request a single buffer (no double-buffering).
        mat_spec = pl.BlockSpec((Dp, Dp), lambda i: (0, 0), pipeline_mode=pl.Buffered(1))
        vec_spec = pl.BlockSpec((1, Dp), lambda i: (0, 0), pipeline_mode=pl.Buffered(1))
    else:
        mat_spec = pl.BlockSpec((Dp, Dp), lambda i: (0, 0))
        vec_spec = pl.BlockSpec((1, Dp), lambda i: (0, 0))
    return pl.pallas_call(
        residual_block_kernel,
        out_shape=jax.ShapeDtypeStruct((Np, Dp), jnp.bfloat16),
        grid=(Np // block_n,),
        in_specs=[row_spec, mat_spec, vec_spec, mat_spec, vec_spec],
        out_specs=row_spec,
        compiler_params=pltpu.CompilerParams(
            dimension_semantics=("parallel",),
            vmem_limit_bytes=vmem_limit),
        cost_estimate=cost,
    )


def residual_block(x, prep, *, tile_n=512):
    """x: (N, D) float array. prep: dict from prepare_params() with padded bf16 weights/shifts."""
    N, D = x.shape
    Dp = prep["dim_padded"]
    assert prep["dim"] == D

    is_v7 = "v7" in _device_kind()

    # Row tile: multiple of 16 sublanes (bf16 packing), clamped to the (padded) batch.
    block_n = min(tile_n, _round_up(N, 16))
    # v7x has 2 TensorCores sharing the "parallel" grid axis: keep at least 2 grid steps.
    if is_v7 and _round_up(N, block_n) // block_n == 1 and block_n >= 32 and block_n % 32 == 0:
        block_n //= 2

    cap = _vmem_cap_bytes()

    def working_set(bn):
        return (2 * Dp * Dp * 2          # two bf16 (Dp, Dp) weights, single-buffered
                + 2 * Dp * 4             # two f32 shift rows, single-buffered
                + 2 * 2 * bn * Dp * 2    # double-buffered bf16 x-in / o-out tiles
                + 2 * bn * Dp * 4)       # f32 intermediate activations headroom

    # Shrink the row tile if the working set would not fit in the VMEM budget.
    while block_n > 16 and working_set(block_n) * 3 // 2 > cap:
        block_n = max(16, _round_up(block_n // 2, 16))

    Np = _round_up(N, block_n)

    # Pad / cast activations only when needed (avoid extra HBM passes when already aligned).
    # Zero padding is inert: zero weight rows/cols, zero shifts and zero residual stay zero.
    if Np == N and Dp == D and x.dtype == jnp.bfloat16:
        xp = x
    elif Np == N and Dp == D:
        xp = x.astype(jnp.bfloat16)
    else:
        xp = jnp.zeros((Np, Dp), jnp.bfloat16).at[:N, :D].set(x.astype(jnp.bfloat16))

    vmem_limit = int(min(cap, max(32 << 20, working_set(block_n) * 3 // 2)))

    cost = pl.CostEstimate(
        flops=4 * Np * Dp * Dp,                      # two (Np,Dp)x(Dp,Dp) matmuls
        transcendentals=0,
        bytes_accessed=2 * Np * Dp * 2               # streamed bf16 x-in + o-out
                       + 2 * Dp * Dp * 2             # one read of each bf16 weight
                       + 2 * Dp * 4)                 # shifts

    args = (xp, prep["w1"], prep["t1"], prep["w2"], prep["t2"])
    try:
        out = _build_call(block_n, Dp, Np, vmem_limit, cost, True)(*args)
    except Exception:
        # Fallback for jax versions without BlockSpec pipeline_mode / Buffered(1) support.
        out = _build_call(block_n, Dp, Np, vmem_limit, cost, False)(*args)

    if Np == N and Dp == D:
        return out
    return out[:N, :D]


def prepare_params(p, *, eps=1e-5, lane_multiple=None):
    """One-time host-side prep: fold eval-mode BatchNorm (+ Linear bias) into per-column weight
       scales and one per-feature shift, pad the feature dim, and cast the weights to bf16.
       y = ((x @ W^T + b) - m) / sqrt(v+eps) * g + beta  ==  x @ (W^T * s) + (b*s + beta - m*s)
    """
    if lane_multiple is None:
        lane_multiple = _lane_multiple()
    D = p["w1"].shape[0]
    Dp = _round_up(D, lane_multiple)

    s1 = p["g1"] / jnp.sqrt(p["v1"] + eps)
    s2 = p["g2"] / jnp.sqrt(p["v2"] + eps)
    w1t = p["w1"].T * s1[None, :]
    t1 = p["b1"] * s1 + (p["be1"] - p["m1"] * s1)
    w2t = p["w2"].T * s2[None, :]
    t2 = p["b2"] * s2 + (p["be2"] - p["m2"] * s2)

    def pad_w(w):   # (D, D) -> (Dp, Dp) bf16 for the MXU
        return jnp.zeros((Dp, Dp), jnp.float32).at[:D, :D].set(w).astype(jnp.bfloat16)

    def pad_t(t):   # (D,) -> (1, Dp) f32
        return jnp.zeros((1, Dp), jnp.float32).at[0, :D].set(t)

    return {"w1": pad_w(w1t), "t1": pad_t(t1),
            "w2": pad_w(w2t), "t2": pad_t(t2),
            "dim": D, "dim_padded": Dp}


def make_params(key, dim):
    """Deterministic synthetic parameters mirroring the PyTorch module."""
    ks = jax.random.split(key, 10)
    p = {}
    # nn.Linear(dim, dim): weight (dim, dim), bias (dim,)
    p["w1"] = jax.random.normal(ks[0], (dim, dim), jnp.float32) * 0.05
    p["b1"] = jax.random.normal(ks[1], (dim,), jnp.float32) * 0.05
    p["w2"] = jax.random.normal(ks[2], (dim, dim), jnp.float32) * 0.05
    p["b2"] = jax.random.normal(ks[3], (dim,), jnp.float32) * 0.05
    # nn.BatchNorm1d(dim): gamma, beta, running_mean, running_var
    p["g1"] = 1.0 + 0.1 * jax.random.normal(ks[4], (dim,), jnp.float32)
    p["be1"] = 0.1 * jax.random.normal(ks[5], (dim,), jnp.float32)
    p["m1"] = 0.1 * jax.random.normal(ks[6], (dim,), jnp.float32)
    p["v1"] = jnp.abs(jax.random.normal(ks[7], (dim,), jnp.float32)) + 0.5
    p["g2"] = 1.0 + 0.1 * jax.random.normal(ks[8], (dim,), jnp.float32)
    p["be2"] = 0.1 * jax.random.normal(ks[9], (dim,), jnp.float32)
    p["m2"] = jnp.zeros((dim,), jnp.float32)
    p["v2"] = jnp.ones((dim,), jnp.float32)
    return p


def reference(x, p, eps=1e-5):
    """Pure-JAX f32 reference matching the PyTorch module in eval mode."""
    h = x @ p["w1"].T + p["b1"]
    h = (h - p["m1"]) / jnp.sqrt(p["v1"] + eps) * p["g1"] + p["be1"]
    h = jnp.maximum(h, 0.0)
    # Dropout is identity in eval mode.
    h = h @ p["w2"].T + p["b2"]
    h = (h - p["m2"]) / jnp.sqrt(p["v2"] + eps) * p["g2"] + p["be2"]
    return jnp.maximum(h + x, 0.0)


if __name__ == "__main__":
    key = jax.random.PRNGKey(0)
    kx, kp = jax.random.split(key)

    N, D = 16, 32                       # small test shapes: batch=16, dim=32
    x = jax.random.normal(kx, (N, D), jnp.float32)
    params = make_params(kp, D)
    prep = prepare_params(params)       # one-time: fold BN + bias, pad, cast to bf16

    out = residual_block(x, prep)
    out = jax.block_until_ready(out)

    ref = reference(x, params)
    assert out.shape == (N, D)
    # bf16 activation/weight streaming with f32 accumulation -> loosened tolerance.
    assert jnp.allclose(out.astype(jnp.float32), ref, atol=3e-2, rtol=3e-2), "mismatch vs reference"
    print("KERNEL_OK")
</pallas_src>

<mosaic_0001>
module attributes {stable_mosaic.version = 11 : i64} {
  func.func @residual_block_kernel(%arg0: i32, %arg1: memref<16x128xbf16, #tpu.memory_space<vmem>>, %arg2: memref<128x128xbf16, #tpu.memory_space<vmem>>, %arg3: memref<1x128xf32, #tpu.memory_space<vmem>>, %arg4: memref<128x128xbf16, #tpu.memory_space<vmem>>, %arg5: memref<1x128xf32, #tpu.memory_space<vmem>>, %arg6: memref<16x128xbf16, #tpu.memory_space<vmem>>) attributes {dimension_semantics = [#tpu.dimension_semantics<parallel>], iteration_bounds = array<i64: 1>, scalar_prefetch = 0 : i64, scratch_operands = 0 : i64, tpu.core_type = #tpu.core_type<tc>, window_params = [{transform_indices = @transform_0, window_bounds = array<i64: 16, 128>}, {pipeline_mode = #tpu.pipeline_mode<synchronous>, transform_indices = @transform_1, window_bounds = array<i64: 128, 128>}, {pipeline_mode = #tpu.pipeline_mode<synchronous>, transform_indices = @transform_2, window_bounds = array<i64: 1, 128>}, {pipeline_mode = #tpu.pipeline_mode<synchronous>, transform_indices = @transform_3, window_bounds = array<i64: 128, 128>}, {pipeline_mode = #tpu.pipeline_mode<synchronous>, transform_indices = @transform_4, window_bounds = array<i64: 1, 128>}, {transform_indices = @transform_5, window_bounds = array<i64: 16, 128>}]} {
    %c0 = arith.constant 0 : index
    %c0_0 = arith.constant 0 : index
    %0 = vector.load %arg1[%c0, %c0_0] : memref<16x128xbf16, #tpu.memory_space<vmem>>, vector<16x128xbf16>
    %c0_1 = arith.constant 0 : index
    %c0_2 = arith.constant 0 : index
    %1 = vector.load %arg2[%c0_1, %c0_2] : memref<128x128xbf16, #tpu.memory_space<vmem>>, vector<128x128xbf16>
    %cst = arith.constant dense<0.000000e+00> : vector<16x128xf32>
    %2 = tpu.matmul %0, %1, %cst {dimension_numbers = #tpu.dot_dimension_numbers<[1], [0], [0], [1], [0, 0, 1, 1], [], []>} : vector<16x128xbf16>, vector<128x128xbf16>, vector<16x128xf32> -> vector<16x128xf32>
    %c0_3 = arith.constant 0 : index
    %c0_4 = arith.constant 0 : index
    %3 = vector.load %arg3[%c0_3, %c0_4] : memref<1x128xf32, #tpu.memory_space<vmem>>, vector<1x128xf32>
    %4 = vector.broadcast %3 : vector<1x128xf32> to vector<16x128xf32>
    %5 = arith.addf %2, %4 : vector<16x128xf32>
    %cst_5 = arith.constant 0.000000e+00 : f32
    %6 = vector.broadcast %cst_5 : f32 to vector<16x128xf32>
    %7 = arith.maximumf %5, %6 : vector<16x128xf32>
    %8 = arith.truncf %7 : vector<16x128xf32> to vector<16x128xbf16>
    %c0_6 = arith.constant 0 : index
    %c0_7 = arith.constant 0 : index
    %9 = vector.load %arg4[%c0_6, %c0_7] : memref<128x128xbf16, #tpu.memory_space<vmem>>, vector<128x128xbf16>
    %cst_8 = arith.constant dense<0.000000e+00> : vector<16x128xf32>
    %10 = tpu.matmul %8, %9, %cst_8 {dimension_numbers = #tpu.dot_dimension_numbers<[1], [0], [0], [1], [0, 0, 1, 1], [], []>} : vector<16x128xbf16>, vector<128x128xbf16>, vector<16x128xf32> -> vector<16x128xf32>
    %c0_9 = arith.constant 0 : index
    %c0_10 = arith.constant 0 : index
    %11 = vector.load %arg5[%c0_9, %c0_10] : memref<1x128xf32, #tpu.memory_space<vmem>>, vector<1x128xf32>
    %12 = vector.broadcast %11 : vector<1x128xf32> to vector<16x128xf32>
    %13 = arith.addf %10, %12 : vector<16x128xf32>
    %14 = arith.extf %0 : vector<16x128xbf16> to vector<16x128xf32>
    %15 = arith.addf %13, %14 : vector<16x128xf32>
    %cst_11 = arith.constant 0.000000e+00 : f32
    %16 = vector.broadcast %cst_11 : f32 to vector<16x128xf32>
    %17 = arith.maximumf %15, %16 : vector<16x128xf32>
    %18 = arith.truncf %17 : vector<16x128xf32> to vector<16x128xbf16>
    %c0_12 = arith.constant 0 : index
    %c0_13 = arith.constant 0 : index
    %19 = vector.load %arg6[%c0_12, %c0_13] : memref<16x128xbf16, #tpu.memory_space<vmem>>, vector<16x128xbf16>
    tpu.vector_store %arg6[%c0_12, %c0_13], %18 {strides = array<i32>} : memref<16x128xbf16, #tpu.memory_space<vmem>>, vector<16x128xbf16>,
    return
  }
  func.func @transform_0(%arg0: i32) -> (i32, i32) {
    %c0_i32 = arith.constant 0 : i32
    %c0_i32_0 = arith.constant 0 : i32
    return %arg0, %c0_i32 : i32, i32
  }
  func.func @transform_1(%arg0: i32) -> (i32, i32) {
    %c0_i32 = arith.constant 0 : i32
    %c0_i32_0 = arith.constant 0 : i32
    %c0_i32_1 = arith.constant 0 : i32
    return %c0_i32, %c0_i32_0 : i32, i32
  }
  func.func @transform_2(%arg0: i32) -> (i32, i32) {
    %c0_i32 = arith.constant 0 : i32
    %c0_i32_0 = arith.constant 0 : i32
    %c0_i32_1 = arith.constant 0 : i32
    return %c0_i32, %c0_i32_0 : i32, i32
  }
  func.func @transform_3(%arg0: i32) -> (i32, i32) {
    %c0_i32 = arith.constant 0 : i32
    %c0_i32_0 = arith.constant 0 : i32
    %c0_i32_1 = arith.constant 0 : i32
    return %c0_i32, %c0_i32_0 : i32, i32
  }
  func.func @transform_4(%arg0: i32) -> (i32, i32) {
    %c0_i32 = arith.constant 0 : i32
    %c0_i32_0 = arith.constant 0 : i32
    %c0_i32_1 = arith.constant 0 : i32
    return %c0_i32, %c0_i32_0 : i32, i32
  }
  func.func @transform_5(%arg0: i32) -> (i32, i32) {
    %c0_i32 = arith.constant 0 : i32
    %c0_i32_0 = arith.constant 0 : i32
    return %arg0, %c0_i32 : i32, i32
  }
}

module attributes {stable_mosaic.version = 11 : i64} {
  func.func @residual_block_kernel(%arg0: i32, %arg1: memref<16x128xbf16, #tpu.memory_space<vmem>>, %arg2: memref<128x128xbf16, #tpu.memory_space<vmem>>, %arg3: memref<1x128xf32, #tpu.memory_space<vmem>>, %arg4: memref<128x128xbf16, #tpu.memory_space<vmem>>, %arg5: memref<1x128xf32, #tpu.memory_space<vmem>>, %arg6: memref<16x128xbf16, #tpu.memory_space<vmem>>) attributes {dimension_semantics = [#tpu.dimension_semantics<parallel>], iteration_bounds = array<i64: 1>, scalar_prefetch = 0 : i64, scratch_operands = 0 : i64, tpu.core_type = #tpu.core_type<tc>, window_params = [{transform_indices = @transform_0, window_bounds = array<i64: 16, 128>}, {pipeline_mode = #tpu.pipeline_mode<synchronous>, transform_indices = @transform_1, window_bounds = array<i64: 128, 128>}, {pipeline_mode = #tpu.pipeline_mode<synchronous>, transform_indices = @transform_2, window_bounds = array<i64: 1, 128>}, {pipeline_mode = #tpu.pipeline_mode<synchronous>, transform_indices = @transform_3, window_bounds = array<i64: 128, 128>}, {pipeline_mode = #tpu.pipeline_mode<synchronous>, transform_indices = @transform_4, window_bounds = array<i64: 1, 128>}, {transform_indices = @transform_5, window_bounds = array<i64: 16, 128>}]} {
    %c0 = arith.constant 0 : index
    %c0_0 = arith.constant 0 : index
    %0 = vector.load %arg1[%c0, %c0_0] : memref<16x128xbf16, #tpu.memory_space<vmem>>, vector<16x128xbf16>
    %c0_1 = arith.constant 0 : index
    %c0_2 = arith.constant 0 : index
    %1 = vector.load %arg2[%c0_1, %c0_2] : memref<128x128xbf16, #tpu.memory_space<vmem>>, vector<128x128xbf16>
    %cst = arith.constant dense<0.000000e+00> : vector<16x128xf32>
    %2 = tpu.matmul %0, %1, %cst {dimension_numbers = #tpu.dot_dimension_numbers<[1], [0], [0], [1], [0, 0, 1, 1], [], []>} : vector<16x128xbf16>, vector<128x128xbf16>, vector<16x128xf32> -> vector<16x128xf32>
    %c0_3 = arith.constant 0 : index
    %c0_4 = arith.constant 0 : index
    %3 = vector.load %arg3[%c0_3, %c0_4] : memref<1x128xf32, #tpu.memory_space<vmem>>, vector<1x128xf32>
    %4 = vector.broadcast %3 : vector<1x128xf32> to vector<16x128xf32>
    %5 = arith.addf %2, %4 : vector<16x128xf32>
    %cst_5 = arith.constant 0.000000e+00 : f32
    %6 = vector.broadcast %cst_5 : f32 to vector<16x128xf32>
    %7 = arith.maximumf %5, %6 : vector<16x128xf32>
    %8 = arith.truncf %7 : vector<16x128xf32> to vector<16x128xbf16>
    %c0_6 = arith.constant 0 : index
    %c0_7 = arith.constant 0 : index
    %9 = vector.load %arg4[%c0_6, %c0_7] : memref<128x128xbf16, #tpu.memory_space<vmem>>, vector<128x128xbf16>
    %cst_8 = arith.constant dense<0.000000e+00> : vector<16x128xf32>
    %10 = tpu.matmul %8, %9, %cst_8 {dimension_numbers = #tpu.dot_dimension_numbers<[1], [0], [0], [1], [0, 0, 1, 1], [], []>} : vector<16x128xbf16>, vector<128x128xbf16>, vector<16x128xf32> -> vector<16x128xf32>
    %c0_9 = arith.constant 0 : index
    %c0_10 = arith.constant 0 : index
    %11 = vector.load %arg5[%c0_9, %c0_10] : memref<1x128xf32, #tpu.memory_space<vmem>>, vector<1x128xf32>
    %12 = vector.broadcast %11 : vector<1x128xf32> to vector<16x128xf32>
    %13 = arith.addf %10, %12 : vector<16x128xf32>
    %14 = arith.extf %0 : vector<16x128xbf16> to vector<16x128xf32>
    %15 = arith.addf %13, %14 : vector<16x128xf32>
    %cst_11 = arith.constant 0.000000e+00 : f32
    %16 = vector.broadcast %cst_11 : f32 to vector<16x128xf32>
    %17 = arith.maximumf %15, %16 : vector<16x128xf32>
    %18 = arith.truncf %17 : vector<16x128xf32> to vector<16x128xbf16>
    %c0_12 = arith.constant 0 : index
    %c0_13 = arith.constant 0 : index
    %19 = vector.load %arg6[%c0_12, %c0_13] : memref<16x128xbf16, #tpu.memory_space<vmem>>, vector<16x128xbf16>
    tpu.vector_store %arg6[%c0_12, %c0_13], %18 {strides = array<i32>} : memref<16x128xbf16, #tpu.memory_space<vmem>>, vector<16x128xbf16>,
    return
  }
  func.func @transform_0(%arg0: i32) -> (i32, i32) {
    %c0_i32 = arith.constant 0 : i32
    %c0_i32_0 = arith.constant 0 : i32
    return %arg0, %c0_i32 : i32, i32
  }
  func.func @transform_1(%arg0: i32) -> (i32, i32) {
    %c0_i32 = arith.constant 0 : i32
    %c0_i32_0 = arith.constant 0 : i32
    %c0_i32_1 = arith.constant 0 : i32
    return %c0_i32, %c0_i32_0 : i32, i32
  }
  func.func @transform_2(%arg0: i32) -> (i32, i32) {
    %c0_i32 = arith.constant 0 : i32
    %c0_i32_0 = arith.constant 0 : i32
    %c0_i32_1 = arith.constant 0 : i32
    return %c0_i32, %c0_i32_0 : i32, i32
  }
  func.func @transform_3(%arg0: i32) -> (i32, i32) {
    %c0_i32 = arith.constant 0 : i32
    %c0_i32_0 = arith.constant 0 : i32
    %c0_i32_1 = arith.constant 0 : i32
    return %c0_i32, %c0_i32_0 : i32, i32
  }
  func.func @transform_4(%arg0: i32) -> (i32, i32) {
    %c0_i32 = arith.constant 0 : i32
    %c0_i32_0 = arith.constant 0 : i32
    %c0_i32_1 = arith.constant 0 : i32
    return %c0_i32, %c0_i32_0 : i32, i32
  }
  func.func @transform_5(%arg0: i32) -> (i32, i32) {
    %c0_i32 = arith.constant 0 : i32
    %c0_i32_0 = arith.constant 0 : i32
    return %arg0, %c0_i32 : i32, i32
  }
}

</mosaic_0001>

<bundles_post_ra>
// kernel: tpu_custom_call.1
= control target key start
LH: loop header
LB: loop body
LE: loop exit
PB: predicated region body
PF: predicated region fallthrough
CT: control target
= control target key end

     0   :  { %10 = vsyncpa [#allocation3], 0  ;;  %s598_s0 = inlined_call_operand.hbm [shape: bf16[16,128], index: 0, kind: input, shape index: {}]   ;;  %s599_s1 = inlined_call_operand.hbm [shape: bf16[128,128], index: 1, kind: input, shape index: {}]   ;;  %s600_s2 = inlined_call_operand.vmem [shape: f32[1,128], index: 2, kind: input, shape index: {}]   ;;  %s601_s3 = inlined_call_operand.hbm [shape: bf16[128,128], index: 3, kind: input, shape index: {}]   ;;  %s602_s4 = inlined_call_operand.vmem [shape: f32[1,128], index: 4, kind: input, shape index: {}]   ;;  %s603_s5 = inlined_call_operand.hbm [shape: bf16[16,128], index: 5, kind: output, shape index: {}]  }
   0x1   :  { %11 = vsyncpa [#allocation6], 0 }
   0x2   :  { %12 = vsyncpa [#allocation4], 0  ;;  %s530_s18 = smov [#allocation5]   ;;  %s531_s20 = smov [#allocation2]  }
   0x3   :  { %s30_s19 = sshll.u32 %s530_s18, 4  ;;  %s18_s21 = sshll.u32 %s531_s20, 4  ;;  %s31_s19 = int_to_ptr.vmem [resolvable:$true] %s30_s19  ;;  %s19_s21 = int_to_ptr.vmem [resolvable:$true] %s18_s21 }
   0x4   :  { %s452_s22 = scalar_lea.vmem %s31_s19, 1024  ;;  %p457_p1 = scmp.lt.s32.totalorder %s31_s19, %s31_s19 }
   0x5   :  { %p453_p0 = scmp.ne.s32.totalorder %s31_s19, %s452_s22  ;;  %p458_p2 = scmp.lt.s32.totalorder %s452_s22, %s452_s22 }
   0x7   :  { %p459_p3 = por %p458_p2, %p457_p1 }
   0x9   :  { %p460_p4 = pnand %p459_p3, %p453_p0 }
   0xb   :  { %463 = shalt.err (!%p460_p4)
}
   0xc   :  { %s532_s23 = smov 64   ;;  %s533_s24 = smov 4  }
   0xd   :  { %36 = dma.hbm_to_vmem [thread:$0]  %s599_s1, 1024, %s31_s19, [#allocation6], %s532_s23, %s532_s23, %s533_s24  }
   0xe   :  { %s472_s27 = scalar_lea.vmem %s19_s21, 128  ;;  %p477_p6 = scmp.lt.s32.totalorder %s19_s21, %s19_s21 }
   0xf   :  { %p473_p5 = scmp.ne.s32.totalorder %s19_s21, %s472_s27  ;;  %p478_p7 = scmp.lt.s32.totalorder %s472_s27, %s472_s27 }
  0x11   :  { %p479_p8 = por %p478_p7, %p477_p6 }
  0x13   :  { %p480_p9 = pnand %p479_p8, %p473_p5 }
  0x15   :  { %483 = shalt.err (!%p480_p9)
}
  0x16   :  { %24 = dma.hbm_to_vmem [thread:$0]  %s598_s0, 128, %s19_s21, [#allocation3], %s532_s23, %s532_s23, %s533_s24  }
  0x17   :  { %s534_s30 = smov [#allocation7]  }
  0x18   :  { %s44_s6 = sshll.u32 %s534_s30, 4  ;;  %s45_s6 = int_to_ptr.vmem [resolvable:$true] %s44_s6 }
  0x19   :  { %s492_s7 = scalar_lea.vmem %s45_s6, 1024  ;;  %p497_p11 = scmp.lt.s32.totalorder %s45_s6, %s45_s6 }
  0x1a   :  { %p493_p10 = scmp.ne.s32.totalorder %s45_s6, %s492_s7  ;;  %p498_p12 = scmp.lt.s32.totalorder %s492_s7, %s492_s7 }
  0x1c   :  { %p499_p13 = por %p498_p12, %p497_p11 }
  0x1e   :  { %p500_p0 = pnand %p499_p13, %p493_p10 }
  0x20   :  { %503 = shalt.err (!%p500_p0)
}
  0x21   :  { %50 = dma.hbm_to_vmem [thread:$0]  %s601_s3, 1024, %s45_s6, [#allocation6], %s532_s23, %s532_s23, %s533_s24  }
  0x22   :  { %524 = dma.done.wait [#allocation3], 128  }
  0x23   :  { %525 = vsyncadd [#allocation3], 4294967168 }
  0x24   :  { %526 = dma.done.wait [#allocation6], 2048  }
  0x25   :  { %527 = vsyncadd [#allocation6], 4294965248  ;;  %v535_v0 = vmov 0.0   ;;  %vm536_vm0 = vmmov 0   ;;  %v426_v1 = vld [vmem:[#allocation5 + $0x38] sm:$0xff]   ;;  %v427_v2 = vld [vmem:[#allocation5 + $0x30] sm:$0xff]  }
  0x26   :  { %378 = vmatprep.subr.bf16.mxu0 %v535_v0  ;;  %394 = vmatprep.mubr.msk.bf16.mxu0 %vm536_vm0, %v535_v0  ;;  %v428_v3 = vld [vmem:[#allocation5 + $0x28] sm:$0xff]   ;;  %v435_v4 = vld [vmem:[#allocation7 + $0x38] sm:$0xff]   ;;  %v429_v5 = vld [vmem:[#allocation5 + $0x20] sm:$0xff]  }
  0x27   :  { %398 = vmatprep.subr.bf16.mxu1 %v535_v0  ;;  %414 = vmatprep.mubr.msk.bf16.mxu1 %vm536_vm0, %v535_v0  ;;  %v436_v6 = vld [vmem:[#allocation7 + $0x30] sm:$0xff]   ;;  %v430_v7 = vld [vmem:[#allocation5 + $0x18] sm:$0xff]   ;;  %v437_v8 = vld [vmem:[#allocation7 + $0x28] sm:$0xff]  }
  0x28   :  { %379 = vmatpush3.bf16.msra.mxu0 %v426_v1  ;;  %399 = vmatpush3.bf16.msra.mxu1 %v435_v4  ;;  %v431_v9 = vld [vmem:[#allocation5 + $0x10] sm:$0xff]   ;;  %v438_v10 = vld [vmem:[#allocation7 + $0x20] sm:$0xff]   ;;  %v432_v11 = vld [vmem:[#allocation5 + $0x8] sm:$0xff]  }
  0x29   :  { %380 = vmatprep.subr.bf16.mxu0 %v535_v0  ;;  %400 = vmatprep.subr.bf16.mxu1 %v535_v0  ;;  %v439_v12 = vld [vmem:[#allocation7 + $0x18] sm:$0xff]   ;;  %v433_v13 = vld [vmem:[#allocation5] sm:$0xff]   ;;  %v440_v15 = vld [vmem:[#allocation7 + $0x10] sm:$0xff]  }
  0x2a   :  { %v63_v14 = vld [vmem:[#allocation2] sm:$0xff]   ;;  %v441_v16 = vld [vmem:[#allocation7 + $0x8] sm:$0xff]   ;;  %v442_v17 = vld [vmem:[#allocation7] sm:$0xff]  }
  0x2b   :  { %v332_v18 = vld [vmem:[%s600_s2] ss:$0 sm:$0xff]  ;;  %v298_v31 = vunpack.c.l.bf16 %v63_v14  ;;  %v299_v33 = vunpack.c.h.bf16 %v63_v14  ;;  %s537_s2 = smov [#allocation8]  }
  0x2c   :  { %381 = vmatpush3.bf16.msra.mxu0 %v427_v2  ;;  %401 = vmatpush3.bf16.msra.mxu1 %v436_v6  ;;  %v342_v28 = vld [vmem:[%s602_s4] ss:$0 sm:$0xff]  ;;  %s319_s11 = sshll.u32 %s537_s2, 4  ;;  %s320_s11 = int_to_ptr.vmem [resolvable:$true] %s319_s11 }
  0x2d   :  { %382 = vmatprep.subr.bf16.mxu0 %v535_v0  ;;  %402 = vmatprep.subr.bf16.mxu1 %v535_v0  ;;  %s504_s12 = scalar_lea.vmem %s320_s11, 128  ;;  %p509_p2 = scmp.lt.s32.totalorder %s320_s11, %s320_s11 }
  0x2e   :  { %p505_p1 = scmp.ne.s32.totalorder %s320_s11, %s504_s12  ;;  %p510_p3 = scmp.lt.s32.totalorder %s504_s12, %s504_s12 }
  0x30   :  { %383 = vmatpush3.bf16.msra.mxu0 %v428_v3  ;;  %403 = vmatpush3.bf16.msra.mxu1 %v437_v8  ;;  %p511_p4 = por %p510_p3, %p509_p2 }
  0x31   :  { %384 = vmatprep.subr.bf16.mxu0 %v535_v0  ;;  %404 = vmatprep.subr.bf16.mxu1 %v535_v0 }
  0x32   :  { %p512_p5 = pnand %p511_p4, %p505_p1 }
  0x34   :  { %385 = vmatpush3.bf16.msra.mxu0 %v429_v5  ;;  %405 = vmatpush3.bf16.msra.mxu1 %v438_v10 }
  0x35   :  { %386 = vmatprep.subr.bf16.mxu0 %v535_v0  ;;  %406 = vmatprep.subr.bf16.mxu1 %v535_v0 }
  0x38   :  { %387 = vmatpush3.bf16.msra.mxu0 %v430_v7  ;;  %407 = vmatpush3.bf16.msra.mxu1 %v439_v12 }
  0x39   :  { %388 = vmatprep.subr.bf16.mxu0 %v535_v0  ;;  %408 = vmatprep.subr.bf16.mxu1 %v535_v0 }
  0x3c   :  { %389 = vmatpush3.bf16.msra.mxu0 %v431_v9  ;;  %409 = vmatpush3.bf16.msra.mxu1 %v440_v15 }
  0x3d   :  { %390 = vmatprep.subr.bf16.mxu0 %v535_v0  ;;  %410 = vmatprep.subr.bf16.mxu1 %v535_v0 }
  0x40   :  { %391 = vmatpush3.bf16.msra.mxu0 %v432_v11  ;;  %411 = vmatpush3.bf16.msra.mxu1 %v441_v16 }
  0x41   :  { %392 = vmatprep.subr.bf16.mxu0 %v535_v0  ;;  %412 = vmatprep.subr.bf16.mxu1 %v535_v0 }
  0x44   :  { %393 = vmatpush3.bf16.msra.mxu0 %v433_v13  ;;  %413 = vmatpush3.bf16.msra.mxu1 %v442_v17 }
  0x47   :  { %395 = vmatmul.mubr.bf16.vlgmr.msra.gmra.mxu0 %v63_v14 }
 0x107   :  { %v176_v19 = vpop.f32.mrf.mxu0 }
 0x108   :  { %v177_v21 = vadd.f32 %v332_v18, %v176_v19 }
 0x109   :  { %v396_v20 = vpop.f32.mrf.mxu0 }
 0x10a   :  { %v183_v25 = vmax.f32 %v177_v21, 0.0 }
 0x10b   :  { %v179_v22 = vpop.f32.mrf.mxu0 }
 0x10c   :  { %v180_v23 = vadd.f32 %v332_v18, %v179_v22 }
 0x10d   :  { %v397_v24 = vpop.f32.mrf.mxu0 }
 0x10e   :  { %v184_v26 = vmax.f32 %v180_v23, 0.0 }
 0x110   :  { %v185_v27 = vpack.c.bf16 %v184_v26, %v183_v25 }
 0x112   :  { %415 = vmatmul.mubr.bf16.vlgmr.msra.gmra.mxu1 %v185_v27 }
 0x1d2   :  { %v291_v29 = vpop.f32.mrf.mxu1 }
 0x1d3   :  { %v292_v30 = vadd.f32 %v342_v28, %v291_v29 }
 0x1d4   :  { %v416_v32 = vpop.f32.mrf.mxu1 }
 0x1d5   :  { %v300_v35 = vadd.f32 %v298_v31, %v292_v30 }
 0x1d6   :  { %v294_v34 = vpop.f32.mrf.mxu1 }
 0x1d7   :  { %v295_v36 = vadd.f32 %v342_v28, %v294_v34  ;;  %v302_v39 = vmax.f32 %v300_v35, 0.0 }
 0x1d8   :  { %v417_v37 = vpop.f32.mrf.mxu1 }
 0x1d9   :  { %v301_v38 = vadd.f32 %v299_v33, %v295_v36 }
 0x1db   :  { %v303_v40 = vmax.f32 %v301_v38, 0.0 }
 0x1dd   :  { %v358_v41 = vpack.c.bf16 %v303_v40, %v302_v39 }
 0x1df   :  { %359 = vst [vmem:[#allocation8] sm:$0xff] %v358_v41  }
 0x1e0   :  { %515 = shalt.err (!%p512_p5)
}
 0x1e1   :  { %325 = dma.vmem_to_hbm [thread:$0]  %s320_s11, 128, %s603_s5, [#allocation4], %s532_s23, %s532_s23, %s533_s24  }
 0x1e2   :  { %528 = dma.done.wait [#allocation4], 128  }
 0x1e3   :  { %529 = vsyncadd [#allocation4], 4294967168 }
 0x1e4   :  { %329 = vsyncpa [#allocation3], 1 }
 0x1e5   :  { %330 = vsyncpa [#allocation6], 1 }
 0x1e6   :  { %331 = vsyncpa [#allocation4], 1 }

// kernel: tpu_custom_call.1
= control target key start
LH: loop header
LB: loop body
LE: loop exit
PB: predicated region body
PF: predicated region fallthrough
CT: control target
= control target key end

     0   :  { %10 = vsyncpa [#allocation3], 0  ;;  %s598_s0 = inlined_call_operand.hbm [shape: bf16[16,128], index: 0, kind: input, shape index: {}]   ;;  %s599_s1 = inlined_call_operand.hbm [shape: bf16[128,128], index: 1, kind: input, shape index: {}]   ;;  %s600_s2 = inlined_call_operand.vmem [shape: f32[1,128], index: 2, kind: input, shape index: {}]   ;;  %s601_s3 = inlined_call_operand.hbm [shape: bf16[128,128], index: 3, kind: input, shape index: {}]   ;;  %s602_s4 = inlined_call_operand.vmem [shape: f32[1,128], index: 4, kind: input, shape index: {}]   ;;  %s603_s5 = inlined_call_operand.hbm [shape: bf16[16,128], index: 5, kind: output, shape index: {}]  }
   0x1   :  { %11 = vsyncpa [#allocation6], 0 }
   0x2   :  { %12 = vsyncpa [#allocation4], 0  ;;  %s530_s18 = smov [#allocation5]   ;;  %s531_s20 = smov [#allocation2]  }
   0x3   :  { %s30_s19 = sshll.u32 %s530_s18, 4  ;;  %s18_s21 = sshll.u32 %s531_s20, 4  ;;  %s31_s19 = int_to_ptr.vmem [resolvable:$true] %s30_s19  ;;  %s19_s21 = int_to_ptr.vmem [resolvable:$true] %s18_s21 }
   0x4   :  { %s452_s22 = scalar_lea.vmem %s31_s19, 1024  ;;  %p457_p1 = scmp.lt.s32.totalorder %s31_s19, %s31_s19 }
   0x5   :  { %p453_p0 = scmp.ne.s32.totalorder %s31_s19, %s452_s22  ;;  %p458_p2 = scmp.lt.s32.totalorder %s452_s22, %s452_s22 }
   0x7   :  { %p459_p3 = por %p458_p2, %p457_p1 }
   0x9   :  { %p460_p4 = pnand %p459_p3, %p453_p0 }
   0xb   :  { %463 = shalt.err (!%p460_p4)
}
   0xc   :  { %s532_s23 = smov 64   ;;  %s533_s24 = smov 4  }
   0xd   :  { %36 = dma.hbm_to_vmem [thread:$0]  %s599_s1, 1024, %s31_s19, [#allocation6], %s532_s23, %s532_s23, %s533_s24  }
   0xe   :  { %s472_s27 = scalar_lea.vmem %s19_s21, 128  ;;  %p477_p6 = scmp.lt.s32.totalorder %s19_s21, %s19_s21 }
   0xf   :  { %p473_p5 = scmp.ne.s32.totalorder %s19_s21, %s472_s27  ;;  %p478_p7 = scmp.lt.s32.totalorder %s472_s27, %s472_s27 }
  0x11   :  { %p479_p8 = por %p478_p7, %p477_p6 }
  0x13   :  { %p480_p9 = pnand %p479_p8, %p473_p5 }
  0x15   :  { %483 = shalt.err (!%p480_p9)
}
  0x16   :  { %24 = dma.hbm_to_vmem [thread:$0]  %s598_s0, 128, %s19_s21, [#allocation3], %s532_s23, %s532_s23, %s533_s24  }
  0x17   :  { %s534_s30 = smov [#allocation7]  }
  0x18   :  { %s44_s6 = sshll.u32 %s534_s30, 4  ;;  %s45_s6 = int_to_ptr.vmem [resolvable:$true] %s44_s6 }
  0x19   :  { %s492_s7 = scalar_lea.vmem %s45_s6, 1024  ;;  %p497_p11 = scmp.lt.s32.totalorder %s45_s6, %s45_s6 }
  0x1a   :  { %p493_p10 = scmp.ne.s32.totalorder %s45_s6, %s492_s7  ;;  %p498_p12 = scmp.lt.s32.totalorder %s492_s7, %s492_s7 }
  0x1c   :  { %p499_p13 = por %p498_p12, %p497_p11 }
  0x1e   :  { %p500_p0 = pnand %p499_p13, %p493_p10 }
  0x20   :  { %503 = shalt.err (!%p500_p0)
}
  0x21   :  { %50 = dma.hbm_to_vmem [thread:$0]  %s601_s3, 1024, %s45_s6, [#allocation6], %s532_s23, %s532_s23, %s533_s24  }
  0x22   :  { %524 = dma.done.wait [#allocation3], 128  }
  0x23   :  { %525 = vsyncadd [#allocation3], 4294967168 }
  0x24   :  { %526 = dma.done.wait [#allocation6], 2048  }
  0x25   :  { %527 = vsyncadd [#allocation6], 4294965248  ;;  %v535_v0 = vmov 0.0   ;;  %vm536_vm0 = vmmov 0   ;;  %v426_v1 = vld [vmem:[#allocation5 + $0x38] sm:$0xff]   ;;  %v427_v2 = vld [vmem:[#allocation5 + $0x30] sm:$0xff]  }
  0x26   :  { %378 = vmatprep.subr.bf16.mxu0 %v535_v0  ;;  %394 = vmatprep.mubr.msk.bf16.mxu0 %vm536_vm0, %v535_v0  ;;  %v428_v3 = vld [vmem:[#allocation5 + $0x28] sm:$0xff]   ;;  %v435_v4 = vld [vmem:[#allocation7 + $0x38] sm:$0xff]   ;;  %v429_v5 = vld [vmem:[#allocation5 + $0x20] sm:$0xff]  }
  0x27   :  { %398 = vmatprep.subr.bf16.mxu1 %v535_v0  ;;  %414 = vmatprep.mubr.msk.bf16.mxu1 %vm536_vm0, %v535_v0  ;;  %v436_v6 = vld [vmem:[#allocation7 + $0x30] sm:$0xff]   ;;  %v430_v7 = vld [vmem:[#allocation5 + $0x18] sm:$0xff]   ;;  %v437_v8 = vld [vmem:[#allocation7 + $0x28] sm:$0xff]  }
  0x28   :  { %379 = vmatpush3.bf16.msra.mxu0 %v426_v1  ;;  %399 = vmatpush3.bf16.msra.mxu1 %v435_v4  ;;  %v431_v9 = vld [vmem:[#allocation5 + $0x10] sm:$0xff]   ;;  %v438_v10 = vld [vmem:[#allocation7 + $0x20] sm:$0xff]   ;;  %v432_v11 = vld [vmem:[#allocation5 + $0x8] sm:$0xff]  }
  0x29   :  { %380 = vmatprep.subr.bf16.mxu0 %v535_v0  ;;  %400 = vmatprep.subr.bf16.mxu1 %v535_v0  ;;  %v439_v12 = vld [vmem:[#allocation7 + $0x18] sm:$0xff]   ;;  %v433_v13 = vld [vmem:[#allocation5] sm:$0xff]   ;;  %v440_v15 = vld [vmem:[#allocation7 + $0x10] sm:$0xff]  }
  0x2a   :  { %v63_v14 = vld [vmem:[#allocation2] sm:$0xff]   ;;  %v441_v16 = vld [vmem:[#allocation7 + $0x8] sm:$0xff]   ;;  %v442_v17 = vld [vmem:[#allocation7] sm:$0xff]  }
  0x2b   :  { %v332_v18 = vld [vmem:[%s600_s2] ss:$0 sm:$0xff]  ;;  %v298_v31 = vunpack.c.l.bf16 %v63_v14  ;;  %v299_v33 = vunpack.c.h.bf16 %v63_v14  ;;  %s537_s2 = smov [#allocation8]  }
  0x2c   :  { %381 = vmatpush3.bf16.msra.mxu0 %v427_v2  ;;  %401 = vmatpush3.bf16.msra.mxu1 %v436_v6  ;;  %v342_v28 = vld [vmem:[%s602_s4] ss:$0 sm:$0xff]  ;;  %s319_s11 = sshll.u32 %s537_s2, 4  ;;  %s320_s11 = int_to_ptr.vmem [resolvable:$true] %s319_s11 }
  0x2d   :  { %382 = vmatprep.subr.bf16.mxu0 %v535_v0  ;;  %402 = vmatprep.subr.bf16.mxu1 %v535_v0  ;;  %s504_s12 = scalar_lea.vmem %s320_s11, 128  ;;  %p509_p2 = scmp.lt.s32.totalorder %s320_s11, %s320_s11 }
  0x2e   :  { %p505_p1 = scmp.ne.s32.totalorder %s320_s11, %s504_s12  ;;  %p510_p3 = scmp.lt.s32.totalorder %s504_s12, %s504_s12 }
  0x30   :  { %383 = vmatpush3.bf16.msra.mxu0 %v428_v3  ;;  %403 = vmatpush3.bf16.msra.mxu1 %v437_v8  ;;  %p511_p4 = por %p510_p3, %p509_p2 }
  0x31   :  { %384 = vmatprep.subr.bf16.mxu0 %v535_v0  ;;  %404 = vmatprep.subr.bf16.mxu1 %v535_v0 }
  0x32   :  { %p512_p5 = pnand %p511_p4, %p505_p1 }
  0x34   :  { %385 = vmatpush3.bf16.msra.mxu0 %v429_v5  ;;  %405 = vmatpush3.bf16.msra.mxu1 %v438_v10 }
  0x35   :  { %386 = vmatprep.subr.bf16.mxu0 %v535_v0  ;;  %406 = vmatprep.subr.bf16.mxu1 %v535_v0 }
  0x38   :  { %387 = vmatpush3.bf16.msra.mxu0 %v430_v7  ;;  %407 = vmatpush3.bf16.msra.mxu1 %v439_v12 }
  0x39   :  { %388 = vmatprep.subr.bf16.mxu0 %v535_v0  ;;  %408 = vmatprep.subr.bf16.mxu1 %v535_v0 }
  0x3c   :  { %389 = vmatpush3.bf16.msra.mxu0 %v431_v9  ;;  %409 = vmatpush3.bf16.msra.mxu1 %v440_v15 }
  0x3d   :  { %390 = vmatprep.subr.bf16.mxu0 %v535_v0  ;;  %410 = vmatprep.subr.bf16.mxu1 %v535_v0 }
  0x40   :  { %391 = vmatpush3.bf16.msra.mxu0 %v432_v11  ;;  %411 = vmatpush3.bf16.msra.mxu1 %v441_v16 }
  0x41   :  { %392 = vmatprep.subr.bf16.mxu0 %v535_v0  ;;  %412 = vmatprep.subr.bf16.mxu1 %v535_v0 }
  0x44   :  { %393 = vmatpush3.bf16.msra.mxu0 %v433_v13  ;;  %413 = vmatpush3.bf16.msra.mxu1 %v442_v17 }
  0x47   :  { %395 = vmatmul.mubr.bf16.vlgmr.msra.gmra.mxu0 %v63_v14 }
 0x107   :  { %v176_v19 = vpop.f32.mrf.mxu0 }
 0x108   :  { %v177_v21 = vadd.f32 %v332_v18, %v176_v19 }
 0x109   :  { %v396_v20 = vpop.f32.mrf.mxu0 }
 0x10a   :  { %v183_v25 = vmax.f32 %v177_v21, 0.0 }
 0x10b   :  { %v179_v22 = vpop.f32.mrf.mxu0 }
 0x10c   :  { %v180_v23 = vadd.f32 %v332_v18, %v179_v22 }
 0x10d   :  { %v397_v24 = vpop.f32.mrf.mxu0 }
 0x10e   :  { %v184_v26 = vmax.f32 %v180_v23, 0.0 }
 0x110   :  { %v185_v27 = vpack.c.bf16 %v184_v26, %v183_v25 }
 0x112   :  { %415 = vmatmul.mubr.bf16.vlgmr.msra.gmra.mxu1 %v185_v27 }
 0x1d2   :  { %v291_v29 = vpop.f32.mrf.mxu1 }
 0x1d3   :  { %v292_v30 = vadd.f32 %v342_v28, %v291_v29 }
 0x1d4   :  { %v416_v32 = vpop.f32.mrf.mxu1 }
 0x1d5   :  { %v300_v35 = vadd.f32 %v298_v31, %v292_v30 }
 0x1d6   :  { %v294_v34 = vpop.f32.mrf.mxu1 }
 0x1d7   :  { %v295_v36 = vadd.f32 %v342_v28, %v294_v34  ;;  %v302_v39 = vmax.f32 %v300_v35, 0.0 }
 0x1d8   :  { %v417_v37 = vpop.f32.mrf.mxu1 }
 0x1d9   :  { %v301_v38 = vadd.f32 %v299_v33, %v295_v36 }
 0x1db   :  { %v303_v40 = vmax.f32 %v301_v38, 0.0 }
 0x1dd   :  { %v358_v41 = vpack.c.bf16 %v303_v40, %v302_v39 }
 0x1df   :  { %359 = vst [vmem:[#allocation8] sm:$0xff] %v358_v41  }
 0x1e0   :  { %515 = shalt.err (!%p512_p5)
}
 0x1e1   :  { %325 = dma.vmem_to_hbm [thread:$0]  %s320_s11, 128, %s603_s5, [#allocation4], %s532_s23, %s532_s23, %s533_s24  }
 0x1e2   :  { %528 = dma.done.wait [#allocation4], 128  }
 0x1e3   :  { %529 = vsyncadd [#allocation4], 4294967168 }
 0x1e4   :  { %329 = vsyncpa [#allocation3], 1 }
 0x1e5   :  { %330 = vsyncpa [#allocation6], 1 }
 0x1e6   :  { %331 = vsyncpa [#allocation4], 1 }

</bundles_post_ra>
